<compile_context>
chip_gen: v5e
topology: v5e:2x2
jax: 0.10.0
libtpu: 0.0.40
codegen_flags: <defaults>
</compile_context>

<pallas_src>
import functools
import math

import jax
import jax.numpy as jnp
import numpy as np
from jax.experimental import pallas as pl
from jax.experimental.pallas import tpu as pltpu


# ----------------------------------------------------------------------------
# Pallas kernel
# ----------------------------------------------------------------------------
def _fused_kernel(wt_ref, x_ref, w_ref, b_ref, a_ref, g_ref, be_ref, o_ref,
                  *, eps):
    """Bloch encode -> folded linear chain -> segmented LayerNorm.

    Shapes (G = batch rows packed per 128-lane row, D = input_dim, O = out):
      wt_ref : (1, 1)        SMEM   theta_transform weight (trainable scalar)
      x_ref  : (TB, G*D)     VMEM   packed input tile
      w_ref  : (G*D, G*O)    VMEM   kron(I_G, W_folded)
      b_ref  : (1, G*O)      VMEM   tiled projection bias
      a_ref  : (G*O, G*O)    VMEM   kron(I_G, ones(O,O)/O)  (segment-mean op)
      g_ref  : (1, G*O)      VMEM   tiled LayerNorm gamma
      be_ref : (1, G*O)      VMEM   tiled LayerNorm beta
      o_ref  : (TB, G*O)     VMEM   packed output tile
    """
    # theta/2 = (pi*w_theta/2)*sigmoid(x) = (pi*w_theta/4)*(tanh(x/2)+1)
    c = (0.25 * math.pi) * wt_ref[0, 0]
    x = x_ref[...]
    h = jnp.cos(c * (jnp.tanh(0.5 * x) + 1.0))          # 2 EUP ops, lane-dense

    # Folded compression stages + final projection: one MXU pass.
    h = jnp.dot(h, w_ref[...], preferred_element_type=jnp.float32) + b_ref[...]

    # Segmented LayerNorm (per O-wide segment == per original batch row),
    # implemented with block-diagonal averaging matmuls to stay lane-dense.
    mean = jnp.dot(h, a_ref[...], preferred_element_type=jnp.float32)
    cen = h - mean
    var = jnp.dot(cen * cen, a_ref[...], preferred_element_type=jnp.float32)
    y = cen * jax.lax.rsqrt(var + eps)
    o_ref[...] = y * g_ref[...] + be_ref[...]


# ----------------------------------------------------------------------------
# Wrapper: parameter folding (plain JAX glue) + pallas_call
# ----------------------------------------------------------------------------
def _round_up(x, m):
    return ((x + m - 1) // m) * m


def _fold_linear_chain(params, input_dim, output_dim):
    """Fold stage matrices and the optional final Linear into one matrix."""
    w = jnp.eye(input_dim, dtype=jnp.float32)
    for m in params["stage_mats"]:
        w = w @ m                                   # (input_dim, current//2)
    if params["proj"] is not None:
        wp, bp = params["proj"]                     # wp: (out, final)
        w = w @ wp.T                                # (input_dim, output_dim)
        b = bp.astype(jnp.float32)
    else:
        b = jnp.zeros((output_dim,), jnp.float32)
    return w, b


def quantum_compression_forward(x, params, *, max_tile_b=4096):
    """Runs the fused Pallas kernel. x: (batch, input_dim) float32."""
    assert x.ndim == 2
    B, D = x.shape
    O = params["gamma"].shape[-1]

    w_fold, b_fold = _fold_linear_chain(params, D, O)

    # Lane packing: put G consecutive batch rows on one 128-lane row so the
    # transcendental-heavy encode and the output store are lane-dense.
    G = max(1, 128 // D)
    row_quant = 8 * G                               # keeps packed sublane dim %8
    tile_b = _round_up(min(max_tile_b, _round_up(B, row_quant)), row_quant)
    Bp = _round_up(B, tile_b)
    if Bp != B:
        x = jnp.pad(x, ((0, Bp - B), (0, 0)))       # no-op when B already tiles

    x2 = x.reshape(Bp // G, G * D)                  # contiguous -> free reshape
    eye_g = jnp.eye(G, dtype=jnp.float32)
    w_big = jnp.kron(eye_g, w_fold)                                  # (G*D,G*O)
    a_seg = jnp.kron(eye_g, jnp.full((O, O), 1.0 / O, jnp.float32))  # (G*O,G*O)
    b_big = jnp.tile(b_fold, G).reshape(1, G * O)
    g_big = jnp.tile(params["gamma"].astype(jnp.float32), G).reshape(1, G * O)
    be_big = jnp.tile(params["beta"].astype(jnp.float32), G).reshape(1, G * O)
    wt = jnp.asarray(params["w_theta"], jnp.float32).reshape(1, 1)

    tb = tile_b // G                                # packed rows per grid step
    grid = (Bp // tile_b,)

    kernel = functools.partial(_fused_kernel, eps=1e-5)
    out2 = pl.pallas_call(
        kernel,
        out_shape=jax.ShapeDtypeStruct((Bp // G, G * O), jnp.float32),
        grid=grid,
        in_specs=[
            pl.BlockSpec(memory_space=pltpu.MemorySpace.SMEM),   # w_theta scalar
            pl.BlockSpec((tb, G * D), lambda i: (i, 0)),         # packed input
            pl.BlockSpec((G * D, G * O), lambda i: (0, 0)),      # folded weight
            pl.BlockSpec((1, G * O), lambda i: (0, 0)),          # bias
            pl.BlockSpec((G * O, G * O), lambda i: (0, 0)),      # segment-mean op
            pl.BlockSpec((1, G * O), lambda i: (0, 0)),          # gamma
            pl.BlockSpec((1, G * O), lambda i: (0, 0)),          # beta
        ],
        out_specs=pl.BlockSpec((tb, G * O), lambda i: (i, 0)),
        compiler_params=pltpu.CompilerParams(
            dimension_semantics=("parallel",)),                  # 2 TCs on v7x
    )(wt, x2, w_big, b_big, a_seg, g_big, be_big)

    return out2.reshape(Bp, O)[:B]


# ----------------------------------------------------------------------------
# Deterministic parameter construction (mirrors the module __init__)
# ----------------------------------------------------------------------------
def _stage_matrix(w_rot, mw):
    """Fold rotation(2x2) + softmax measurement weights into a (D, D/2) map."""
    P = mw.shape[0]
    probs = jax.nn.softmax(mw, axis=-1)        # (P, 2)
    coeff = probs @ w_rot                      # coeff[p, k] multiplies x[2p+k]
    D = 2 * P
    m = jnp.zeros((D, P), dtype=jnp.float32)
    rows = jnp.arange(P)
    m = m.at[2 * rows, rows].set(coeff[:, 0])
    m = m.at[2 * rows + 1, rows].set(coeff[:, 1])
    return m


def init_params(key, input_dim, output_dim, compression_stages):
    keys = jax.random.split(key, compression_stages + 2)
    stages = []
    current = input_dim
    for s in range(compression_stages):
        if current <= output_dim:
            break
        pairs = current // 2
        w_rot = jnp.eye(2, dtype=jnp.float32)                    # identity init
        mw = jax.random.normal(keys[s], (pairs, 2), jnp.float32) * 0.1
        stages.append((w_rot, mw))
        current //= 2
    final_dim = current

    if final_dim != output_dim:
        bound = 1.0 / math.sqrt(final_dim)
        wp = jax.random.uniform(keys[-2], (output_dim, final_dim),
                                jnp.float32, minval=-bound, maxval=bound)
        bp = jax.random.uniform(keys[-1], (output_dim,),
                                jnp.float32, minval=-bound, maxval=bound)
        proj = (wp, bp)
    else:
        proj = None

    return {
        "w_theta": 1.0,                         # theta_transform weight init
        "w_phi": 1.0,                           # phi_transform (dead in fwd)
        "stages": stages,                       # raw params (for reference)
        "stage_mats": [_stage_matrix(w, mw) for (w, mw) in stages],
        "proj": proj,
        "gamma": jnp.ones((output_dim,), jnp.float32),
        "beta": jnp.zeros((output_dim,), jnp.float32),
        "final_dim": final_dim,
    }


# ----------------------------------------------------------------------------
# Pure-JAX reference (direct transcription of the PyTorch forward)
# ----------------------------------------------------------------------------
def reference_forward(x, params):
    s = jax.nn.sigmoid(x)
    theta = jnp.pi * params["w_theta"] * s
    phi = 2.0 * jnp.pi * params["w_phi"] * s
    real = jnp.cos(theta / 2.0)
    imag = jnp.sin(theta / 2.0) * jnp.cos(phi)
    states = jnp.stack([real, imag], axis=-1)                   # (B, D, 2)
    for (w_rot, mw) in params["stages"]:
        B, D, S = states.shape
        P = D // 2
        pairs = states.reshape(B, P, 2, S)                      # (B, P, 2, S)
        processed = jnp.einsum("jk,bpks->bpjs", w_rot, pairs)
        probs = jax.nn.softmax(mw, axis=-1)
        states = jnp.einsum("pj,bpjs->bps", probs, processed)
    comp = states[:, :, 0]
    if params["proj"] is not None:
        wp, bp = params["proj"]
        comp = comp @ wp.T + bp
    mean = comp.mean(-1, keepdims=True)
    var = ((comp - mean) ** 2).mean(-1, keepdims=True)
    return (comp - mean) / jnp.sqrt(var + 1e-5) * params["gamma"] + params["beta"]


# ----------------------------------------------------------------------------
if __name__ == "__main__":
    key = jax.random.PRNGKey(0)
    kx, kp = jax.random.split(key)

    # Small config consistent with the module: 32 -> (16 -> 8) -> Linear -> 12
    B, INPUT_DIM, OUTPUT_DIM, STAGES = 2, 32, 12, 3
    x = jax.random.normal(kx, (B, INPUT_DIM), dtype=jnp.float32)
    params = init_params(kp, INPUT_DIM, OUTPUT_DIM, STAGES)

    out = quantum_compression_forward(x, params)
    out = jax.block_until_ready(out)

    ref = reference_forward(x, params)
    np.testing.assert_allclose(np.asarray(out), np.asarray(ref),
                               rtol=5e-4, atol=5e-4)
    assert out.shape == (B, OUTPUT_DIM) and out.dtype == jnp.float32

    print("KERNEL_OK")
</pallas_src>

<mosaic_0001>
module attributes {stable_mosaic.version = 11 : i64} {
  func.func @_fused_kernel(%arg0: i32, %arg1: memref<1x1xf32, #tpu.memory_space<smem>>, %arg2: memref<8x128xf32, #tpu.memory_space<vmem>>, %arg3: memref<128x48xf32, #tpu.memory_space<vmem>>, %arg4: memref<1x48xf32, #tpu.memory_space<vmem>>, %arg5: memref<48x48xf32, #tpu.memory_space<vmem>>, %arg6: memref<1x48xf32, #tpu.memory_space<vmem>>, %arg7: memref<1x48xf32, #tpu.memory_space<vmem>>, %arg8: memref<8x48xf32, #tpu.memory_space<vmem>>) attributes {dimension_semantics = [#tpu.dimension_semantics<parallel>], iteration_bounds = array<i64: 1>, scalar_prefetch = 0 : i64, scratch_operands = 0 : i64, tpu.core_type = #tpu.core_type<tc>, window_params = [{transform_indices = @transform_0, window_bounds = array<i64: 1, 1>}, {transform_indices = @transform_1, window_bounds = array<i64: 8, 128>}, {pipeline_mode = #tpu.pipeline_mode<synchronous>, transform_indices = @transform_2, window_bounds = array<i64: 128, 48>}, {pipeline_mode = #tpu.pipeline_mode<synchronous>, transform_indices = @transform_3, window_bounds = array<i64: 1, 48>}, {pipeline_mode = #tpu.pipeline_mode<synchronous>, transform_indices = @transform_4, window_bounds = array<i64: 48, 48>}, {pipeline_mode = #tpu.pipeline_mode<synchronous>, transform_indices = @transform_5, window_bounds = array<i64: 1, 48>}, {pipeline_mode = #tpu.pipeline_mode<synchronous>, transform_indices = @transform_6, window_bounds = array<i64: 1, 48>}, {transform_indices = @transform_7, window_bounds = array<i64: 8, 48>}]} {
    %c0 = arith.constant 0 : index
    %c0_0 = arith.constant 0 : index
    %0 = memref.load %arg1[%c0, %c0_0] : memref<1x1xf32, #tpu.memory_space<smem>>
    %cst = arith.constant 0.785398185 : f32
    %1 = arith.mulf %cst, %0 : f32
    %c0_1 = arith.constant 0 : index
    %c0_2 = arith.constant 0 : index
    %2 = vector.load %arg2[%c0_1, %c0_2] : memref<8x128xf32, #tpu.memory_space<vmem>>, vector<8x128xf32>
    %cst_3 = arith.constant 5.000000e-01 : f32
    %3 = vector.broadcast %cst_3 : f32 to vector<8x128xf32>
    %4 = arith.mulf %3, %2 : vector<8x128xf32>
    %5 = math.tanh %4 : vector<8x128xf32>
    %cst_4 = arith.constant 1.000000e+00 : f32
    %6 = vector.broadcast %cst_4 : f32 to vector<8x128xf32>
    %7 = arith.addf %5, %6 : vector<8x128xf32>
    %8 = vector.broadcast %1 : f32 to vector<8x128xf32>
    %9 = arith.mulf %8, %7 : vector<8x128xf32>
    %10 = math.cos %9 : vector<8x128xf32>
    %c0_5 = arith.constant 0 : index
    %c0_6 = arith.constant 0 : index
    %11 = vector.load %arg3[%c0_5, %c0_6] : memref<128x48xf32, #tpu.memory_space<vmem>>, vector<128x48xf32>
    %cst_7 = arith.constant dense<0.000000e+00> : vector<8x48xf32>
    %12 = tpu.matmul %10, %11, %cst_7 {dimension_numbers = #tpu.dot_dimension_numbers<[1], [0], [0], [1], [0, 0, 1, 1], [], []>} : vector<8x128xf32>, vector<128x48xf32>, vector<8x48xf32> -> vector<8x48xf32>
    %c0_8 = arith.constant 0 : index
    %c0_9 = arith.constant 0 : index
    %13 = vector.load %arg4[%c0_8, %c0_9] : memref<1x48xf32, #tpu.memory_space<vmem>>, vector<1x48xf32>
    %14 = vector.broadcast %13 : vector<1x48xf32> to vector<8x48xf32>
    %15 = arith.addf %12, %14 : vector<8x48xf32>
    %c0_10 = arith.constant 0 : index
    %c0_11 = arith.constant 0 : index
    %16 = vector.load %arg5[%c0_10, %c0_11] : memref<48x48xf32, #tpu.memory_space<vmem>>, vector<48x48xf32>
    %cst_12 = arith.constant dense<0.000000e+00> : vector<8x48xf32>
    %17 = tpu.matmul %15, %16, %cst_12 {dimension_numbers = #tpu.dot_dimension_numbers<[1], [0], [0], [1], [0, 0, 1, 1], [], []>} : vector<8x48xf32>, vector<48x48xf32>, vector<8x48xf32> -> vector<8x48xf32>
    %18 = arith.subf %15, %17 : vector<8x48xf32>
    %19 = arith.mulf %18, %18 : vector<8x48xf32>
    %c0_13 = arith.constant 0 : index
    %c0_14 = arith.constant 0 : index
    %20 = vector.load %arg5[%c0_13, %c0_14] : memref<48x48xf32, #tpu.memory_space<vmem>>, vector<48x48xf32>
    %cst_15 = arith.constant dense<0.000000e+00> : vector<8x48xf32>
    %21 = tpu.matmul %19, %20, %cst_15 {dimension_numbers = #tpu.dot_dimension_numbers<[1], [0], [0], [1], [0, 0, 1, 1], [], []>} : vector<8x48xf32>, vector<48x48xf32>, vector<8x48xf32> -> vector<8x48xf32>
    %cst_16 = arith.constant 9.99999974E-6 : f32
    %22 = vector.broadcast %cst_16 : f32 to vector<8x48xf32>
    %23 = arith.addf %21, %22 : vector<8x48xf32>
    %24 = math.rsqrt %23 : vector<8x48xf32>
    %25 = arith.mulf %18, %24 : vector<8x48xf32>
    %c0_17 = arith.constant 0 : index
    %c0_18 = arith.constant 0 : index
    %26 = vector.load %arg6[%c0_17, %c0_18] : memref<1x48xf32, #tpu.memory_space<vmem>>, vector<1x48xf32>
    %27 = vector.broadcast %26 : vector<1x48xf32> to vector<8x48xf32>
    %28 = arith.mulf %25, %27 : vector<8x48xf32>
    %c0_19 = arith.constant 0 : index
    %c0_20 = arith.constant 0 : index
    %29 = vector.load %arg7[%c0_19, %c0_20] : memref<1x48xf32, #tpu.memory_space<vmem>>, vector<1x48xf32>
    %30 = vector.broadcast %29 : vector<1x48xf32> to vector<8x48xf32>
    %31 = arith.addf %28, %30 : vector<8x48xf32>
    %c0_21 = arith.constant 0 : index
    %c0_22 = arith.constant 0 : index
    %32 = vector.load %arg8[%c0_21, %c0_22] : memref<8x48xf32, #tpu.memory_space<vmem>>, vector<8x48xf32>
    tpu.vector_store %arg8[%c0_21, %c0_22], %31 {strides = array<i32>} : memref<8x48xf32, #tpu.memory_space<vmem>>, vector<8x48xf32>,
    return
  }
  func.func @transform_0(%arg0: i32) -> (i32, i32) {
    %c0_i32 = arith.constant 0 : i32
    %c0_i32_0 = arith.constant 0 : i32
    %c0_i32_1 = arith.constant 0 : i32
    return %c0_i32, %c0_i32_0 : i32, i32
  }
  func.func @transform_1(%arg0: i32) -> (i32, i32) {
    %c0_i32 = arith.constant 0 : i32
    %c0_i32_0 = arith.constant 0 : i32
    return %arg0, %c0_i32 : i32, i32
  }
  func.func @transform_2(%arg0: i32) -> (i32, i32) {
    %c0_i32 = arith.constant 0 : i32
    %c0_i32_0 = arith.constant 0 : i32
    %c0_i32_1 = arith.constant 0 : i32
    return %c0_i32, %c0_i32_0 : i32, i32
  }
  func.func @transform_3(%arg0: i32) -> (i32, i32) {
    %c0_i32 = arith.constant 0 : i32
    %c0_i32_0 = arith.constant 0 : i32
    %c0_i32_1 = arith.constant 0 : i32
    return %c0_i32, %c0_i32_0 : i32, i32
  }
  func.func @transform_4(%arg0: i32) -> (i32, i32) {
    %c0_i32 = arith.constant 0 : i32
    %c0_i32_0 = arith.constant 0 : i32
    %c0_i32_1 = arith.constant 0 : i32
    return %c0_i32, %c0_i32_0 : i32, i32
  }
  func.func @transform_5(%arg0: i32) -> (i32, i32) {
    %c0_i32 = arith.constant 0 : i32
    %c0_i32_0 = arith.constant 0 : i32
    %c0_i32_1 = arith.constant 0 : i32
    return %c0_i32, %c0_i32_0 : i32, i32
  }
  func.func @transform_6(%arg0: i32) -> (i32, i32) {
    %c0_i32 = arith.constant 0 : i32
    %c0_i32_0 = arith.constant 0 : i32
    %c0_i32_1 = arith.constant 0 : i32
    return %c0_i32, %c0_i32_0 : i32, i32
  }
  func.func @transform_7(%arg0: i32) -> (i32, i32) {
    %c0_i32 = arith.constant 0 : i32
    %c0_i32_0 = arith.constant 0 : i32
    return %arg0, %c0_i32 : i32, i32
  }
}

</mosaic_0001>

<bundles_post_ra>
// kernel: tpu_custom_call.1
= control target key start
LH: loop header
LB: loop body
LE: loop exit
PB: predicated region body
PF: predicated region fallthrough
CT: control target
= control target key end

     0   :  { %s558_s0 = inlined_call_operand.<no memory space> [shape: f32[1,1], index: 0, kind: input, shape index: {}]   ;;  %s559_s1 = inlined_call_operand.vmem [shape: f32[8,128], index: 1, kind: input, shape index: {}]   ;;  %s560_s2 = inlined_call_operand.vmem [shape: f32[128,48], index: 2, kind: input, shape index: {}]   ;;  %s561_s3 = inlined_call_operand.vmem [shape: f32[1,48], index: 3, kind: input, shape index: {}]   ;;  %s562_s4 = inlined_call_operand.vmem [shape: f32[48,48], index: 4, kind: input, shape index: {}]   ;;  %s563_s5 = inlined_call_operand.vmem [shape: f32[1,48], index: 5, kind: input, shape index: {}]   ;;  %s564_s6 = inlined_call_operand.vmem [shape: f32[1,48], index: 6, kind: input, shape index: {}]   ;;  %s565_s7 = inlined_call_operand.hbm [shape: f32[8,48], index: 7, kind: output, shape index: {}]  }
   0x1   :  { %v205_v0 = vld [vmem:[%s560_s2 + $0x78] sm:$0xff]  ;;  %v204_v1 = vld [vmem:[%s560_s2 + $0x70] sm:$0xff]  ;;  %v203_v2 = vld [vmem:[%s560_s2 + $0x68] sm:$0xff] }
   0x2   :  { %210 = vmatpush.msra.mxu0 %v205_v0  ;;  %v202_v3 = vld [vmem:[%s560_s2 + $0x60] sm:$0xff]  ;;  %v201_v5 = vld [vmem:[%s560_s2 + $0x58] sm:$0xff] }
   0x3   :  { %v30_v4 = vld [vmem:[%s559_s1] sm:$0xff] }
   0x4   :  { %211 = vmatpush.msra.mxu0 %v204_v1  ;;  %v31_v6 = vmul.f32 0.5, %v30_v4 }
   0x6   :  { %212 = vmatpush.msra.mxu0 %v203_v2 }
   0x7   :  { %13 = vsyncpa [#allocation4], 0  ;;  %v200_v7 = vld [vmem:[%s560_s2 + $0x50] sm:$0xff]  ;;  %339 = vtanh.f32 %v31_v6  ;;  %v199_v8 = vld [vmem:[%s560_s2 + $0x48] sm:$0xff]  ;;  %s29_s1 = smul.f32 0.7853982, %s558_s0 }
   0x8   :  { %213 = vmatpush.msra.mxu0 %v202_v3  ;;  %v198_v9 = vld [vmem:[%s560_s2 + $0x40] sm:$0xff]  ;;  %v197_v11 = vld [vmem:[%s560_s2 + $0x38] sm:$0xff]  ;;  %v196_v14 = vld [vmem:[%s560_s2 + $0x30] sm:$0xff]  ;;  %v369_v33 = vmov 683565275   ;;  %s376_s26 = smov [#allocation3]  }
   0x9   :  { %v34_v12 = vstv %s29_s1  ;;  %v195_v16 = vld [vmem:[%s560_s2 + $0x28] sm:$0xff]  ;;  %v194_v18 = vld [vmem:[%s560_s2 + $0x20] sm:$0xff]  ;;  %v193_v20 = vld [vmem:[%s560_s2 + $0x18] sm:$0xff]  ;;  %v370_v35 = vmov 2475754826   ;;  %s312_s27 = sshll.u32 %s376_s26, 4  ;;  %s313_s27 = int_to_ptr.vmem [resolvable:$true] %s312_s27 }
   0xa   :  { %214 = vmatpush.msra.mxu0 %v201_v5  ;;  %v192_v23 = vld [vmem:[%s560_s2 + $0x10] sm:$0xff]  ;;  %v191_v25 = vld [vmem:[%s560_s2 + $0x8] sm:$0xff]  ;;  %v190_v27 = vld [vmem:[%s560_s2] sm:$0xff]  ;;  %v371_v37 = vmov 2131351028   ;;  %s314_s30 = sshll.u32 %s565_s7, 4  ;;  %s315_s30 = int_to_ptr.hbm [resolvable:$true] %s314_s30 }
   0xb   :  { %v372_v39 = vmov 2102212464   ;;  %v373_v41 = vmov 920167782   ;;  %v374_v47 = vmov 1326507024  }
   0xc   :  { %215 = vmatpush.msra.mxu0 %v200_v7 }
   0xd   :  { %v340_v10 = vpop.eup %339 }
   0xe   :  { %216 = vmatpush.msra.mxu0 %v199_v8  ;;  %v33_v13 = vadd.f32 1.0, %v340_v10 }
  0x10   :  { %217 = vmatpush.msra.mxu0 %v198_v9  ;;  %v453_v15 = vmul.f32 %v34_v12, %v33_v13 }
  0x12   :  { %218 = vmatpush.msra.mxu0 %v197_v11  ;;  %v39_v17 = vand.u32 2139095040, %v453_v15  ;;  %v36_v21 = vand.u32 2147483647, %v453_v15  ;;  %vm38_vm12 = vcmp.lt.s32.totalorder %v453_v15, 0 }
  0x14   :  { %219 = vmatpush.msra.mxu0 %v196_v14  ;;  %v40_v19 = vshrl.u32 %v39_v17, 23  ;;  %v43_v26 = vand.u32 8388607, %v36_v21  ;;  %vm527_vm13 = vcmp.le.f32.partialorder %v36_v21, 0.7853982 }
  0x16   :  { %220 = vmatpush.msra.mxu0 %v195_v16  ;;  %v323_v22 = vadd.s32 4294967169, %v40_v19  ;;  %v44_v30 = vor.u32 8388608, %v43_v26 }
  0x18   :  { %221 = vmatpush.msra.mxu0 %v194_v18  ;;  %v46_v24 = vadd.s32 1, %v323_v22  ;;  %v480_v49 = vshll.u32 %v44_v30, 8 }
  0x1a   :  { %222 = vmatpush.msra.mxu0 %v193_v20  ;;  %vm47_vm0 = vcmp.gt.s32.totalorder %v46_v24, 0  ;;  %v85_v61 = vand.u32 65535, %v480_v49  ;;  %v86_v62 = vshrl.u32 %v480_v49, 16 }
  0x1b   :  { %v48_v28 = vsel %vm47_vm0, %v46_v24, 0 }
  0x1c   :  { %223 = vmatpush.msra.mxu0 %v192_v23  ;;  %v50_v29 = vand.u32 31, %v48_v28  ;;  %v477_v31 = vshrl.u32 %v48_v28, 5  ;;  %v375_v23 = vmov 0  }
  0x1e   :  { %224 = vmatpush.msra.mxu0 %v191_v25  ;;  %v51_v32 = vsub.s32 32, %v50_v29  ;;  %v53_v34 = vshll.u32 %v369_v33, %v50_v29  ;;  %v56_v36 = vshll.u32 %v370_v35, %v50_v29  ;;  %v59_v38 = vshll.u32 %v371_v37, %v50_v29 }
  0x1f   :  { %v62_v40 = vshll.u32 %v372_v39, %v50_v29  ;;  %v65_v42 = vshll.u32 %v373_v41, %v50_v29  ;;  %vm68_vm1 = vcmp.lt.s32.totalorder %v477_v31, 1  ;;  %vm71_vm2 = vcmp.lt.s32.totalorder %v477_v31, 4 }
  0x20   :  { %225 = vmatpush.msra.mxu0 %v190_v27  ;;  %v54_v43 = vshrl.u32 %v370_v35, %v51_v32  ;;  %v57_v44 = vshrl.u32 %v371_v37, %v51_v32  ;;  %v60_v45 = vshrl.u32 %v372_v39, %v51_v32  ;;  %v63_v46 = vshrl.u32 %v373_v41, %v51_v32 }
  0x21   :  { %v66_v48 = vshrl.u32 %v374_v47, %v51_v32  ;;  %vm70_vm3 = vcmp.lt.s32.totalorder %v477_v31, 3  ;;  %vm69_vm4 = vcmp.lt.s32.totalorder %v477_v31, 2  ;;  %v52_v5 = vshrl.u32 %v369_v33, %v51_v32 }
  0x22   :  { %v55_v50 = vor.u32 %v54_v43, %v53_v34  ;;  %v58_v51 = vor.u32 %v57_v44, %v56_v36  ;;  %v61_v52 = vor.u32 %v60_v45, %v59_v38  ;;  %v64_v53 = vor.u32 %v63_v46, %v62_v40 }
  0x23   :  { %v67_v54 = vor.u32 %v66_v48, %v65_v42 }
  0x24   :  { %v76_v55 = vsel %vm68_vm1, %v55_v50, %v58_v51  ;;  %v80_v56 = vsel %vm68_vm1, %v58_v51, %v61_v52  ;;  %v77_v57 = vsel %vm71_vm2, %v64_v53, 920167782  ;;  %v72_v19 = vsel %vm68_vm1, %v52_v5, %v55_v50  ;;  %v233_v5 = vld [vmem:[%s562_s4 + $0x18] sm:$0xff] }
  0x25   :  { %v81_v58 = vsel %vm71_vm2, %v67_v54, 1326507024  ;;  %v78_v59 = vsel %vm70_vm3, %v61_v52, %v77_v57  ;;  %v73_v22 = vsel %vm71_vm2, %v61_v52, 2102212464  ;;  %vm179_vm1 = vweird.f32 %v453_v15 }
  0x26   :  { %v82_v60 = vsel %vm70_vm3, %v64_v53, %v81_v58  ;;  %v79_v63 = vsel %vm69_vm4, %v76_v55, %v78_v59  ;;  %v74_v33 = vsel %vm70_vm3, %v58_v51, %v73_v22  ;;  %vm236_vm2 = vcmask 392192  }
  0x27   :  { %v83_v0 = vsel %vm69_vm4, %v80_v56, %v82_v60  ;;  %v109_v3 = vand.u32 65535, %v79_v63  ;;  %v110_v4 = vshrl.u32 %v79_v63, 16  ;;  %v75_v41 = vsel %vm69_vm4, %v72_v19, %v74_v33 }
  0x28   :  { %v87_v1 = vand.u32 65535, %v83_v0  ;;  %v88_v2 = vshrl.u32 %v83_v0, 16  ;;  %v129_v45 = vmul.u32 %v480_v49, %v75_v41 }
  0x29   :  { %v111_v9 = vmul.u32 %v109_v3, %v85_v61  ;;  %v112_v10 = vmul.u32 %v110_v4, %v85_v61  ;;  %v113_v11 = vmul.u32 %v109_v3, %v86_v62  ;;  %v114_v16 = vmul.u32 %v110_v4, %v86_v62 }
  0x2a   :  { %v89_v6 = vmul.u32 %v87_v1, %v85_v61  ;;  %v90_v7 = vmul.u32 %v88_v2, %v85_v61  ;;  %v91_v8 = vmul.u32 %v87_v1, %v86_v62  ;;  %v92_v12 = vmul.u32 %v88_v2, %v86_v62  ;;  %v235_v1 = vld [vmem:[%s562_s4 + $0x28] sm:$0xff]  ;;  %v234_v2 = vld [vmem:[%s562_s4 + $0x20] sm:$0xff] }
  0x2b   :  { %v115_v17 = vshll.u32 %v112_v10, 16  ;;  %v117_v18 = vshll.u32 %v113_v11, 16  ;;  %v116_v30 = vshrl.u32 %v112_v10, 16  ;;  %v118_v37 = vshrl.u32 %v113_v11, 16  ;;  %250 = vmatpush.msra.mxu1 %v235_v1  ;;  %275 = vmatpush.msra.mxu2 %v235_v1 }
  0x2c   :  { %v93_v13 = vshll.u32 %v90_v7, 16  ;;  %v95_v14 = vshll.u32 %v91_v8, 16  ;;  %v94_v26 = vshrl.u32 %v90_v7, 16  ;;  %v96_v34 = vshrl.u32 %v91_v8, 16  ;;  %v232_v7 = vld [vmem:[%s562_s4 + $0x10] sm:$0xff] }
  0x2d   :  { %vm119_vm6 = vc.u32 %v111_v9, %v115_v17  ;;  %v121_v25 = vadd.s32 %v115_v17, %v111_v9  ;;  %251 = vmatpush.msra.mxu1 %v234_v2  ;;  %276 = vmatpush.msra.mxu2 %v234_v2 }
  0x2e   :  { %vm97_vm5 = vc.u32 %v89_v6, %v93_v13  ;;  %v99_v20 = vadd.s32 %v93_v13, %v89_v6  ;;  %v120_v28 = vsel %vm119_vm6, 1, %v375_v23 }
  0x2f   :  { %v98_v24 = vsel %vm97_vm5, 1, %v375_v23  ;;  %v122_v32 = vadd.s32 %v120_v28, %v114_v16  ;;  %vm123_vm8 = vc.u32 %v121_v25, %v117_v18  ;;  %v125_v40 = vadd.s32 %v121_v25, %v117_v18  ;;  %252 = vmatpush.msra.mxu1 %v233_v5  ;;  %277 = vmatpush.msra.mxu2 %v233_v5 }
  0x30   :  { %v100_v27 = vadd.s32 %v98_v24, %v92_v12  ;;  %vm101_vm7 = vc.u32 %v99_v20, %v95_v14  ;;  %v124_v36 = vsel %vm123_vm8, 1, %v375_v23 }
  0x31   :  { %v102_v29 = vsel %vm101_vm7, 1, %v375_v23  ;;  %v126_v38 = vadd.s32 %v124_v36, %v122_v32  ;;  %253 = vmatpush.msra.mxu1 %v232_v7  ;;  %278 = vmatpush.msra.mxu2 %v232_v7 }
  0x32   :  { %v104_v35 = vadd.s32 %v102_v29, %v100_v27 }
  0x33   :  { %v127_v42 = vadd.s32 %v126_v38, %v116_v30 }
  0x34   :  { %v105_v39 = vadd.s32 %v104_v35, %v94_v26 }
  0x35   :  { %v128_v44 = vadd.s32 %v127_v42, %v118_v37 }
  0x36   :  { %v106_v43 = vadd.s32 %v105_v39, %v96_v34  ;;  %v231_v39 = vld [vmem:[%s562_s4 + $0x8] sm:$0xff] }
  0x37   :  { %v132_v46 = vadd.s32 1, %v128_v44  ;;  %254 = vmatpush.msra.mxu1 %v231_v39  ;;  %279 = vmatpush.msra.mxu2 %v231_v39 }
  0x38   :  { %vm131_vm9 = vc.u32 %v106_v43, %v125_v40  ;;  %v130_v31 = vadd.s32 %v125_v40, %v106_v43  ;;  %v230_v40 = vld [vmem:[%s562_s4] sm:$0xff] }
  0x39   :  { %v133_v47 = vsel %vm131_vm9, %v132_v46, %v128_v44  ;;  %255 = vmatpush.msra.mxu1 %v230_v40  ;;  %280 = vmatpush.msra.mxu2 %v230_v40 }
  0x3a   :  { %v134_v48 = vadd.s32 %v133_v47, %v129_v45 }
  0x3c   :  { %v135_v50 = vadd.s32 536870912, %v134_v48 }
  0x3e   :  { %v136_v51 = vshrl.u32 %v135_v50, 30 }
  0x40   :  { %v137_v52 = vshll.u32 %v136_v51, 30  ;;  %v160_v12 = vsub.s32 4, %v136_v51 }
  0x42   :  { %v138_v53 = vsub.s32 %v134_v48, %v137_v52  ;;  %v161_v18 = vsel %vm38_vm12, %v160_v12, %v136_v51 }
  0x43   :  { %v163_v21 = vsel %vm527_vm13, 0, %v161_v18 }
  0x44   :  { %vm139_vm10 = vcmp.lt.s32.totalorder %v138_v53, 0  ;;  %v140_v54 = vsub.s32 0, %v138_v53  ;;  %v180_v26 = vand.u32 3, %v163_v21 }
  0x46   :  { %v141_v55 = vsel %vm139_vm10, %v140_v54, %v138_v53  ;;  %vm185_vm14 = vcmp.eq.s32.totalorder %v180_v26, 2  ;;  %vm182_vm15 = vcmp.eq.s32.totalorder %v180_v26, 0  ;;  %vm181_vm0 = vcmp.lt.s32.totalorder %v180_v26, 2 }
  0x47   :  { %v142_v56 = vclz %v141_v55  ;;  %v337_v55 = vld [vmem:[%s563_s5] ss:$0 sm:$0xff] }
  0x49   :  { %v324_v57 = vadd.s32 4294967294, %v142_v56 }
  0x4b   :  { %vm325_vm11 = vcmp.lt.s32.totalorder %v324_v57, 0 }
  0x4c   :  { %v145_v58 = vsel %vm325_vm11, 0, %v324_v57 }
  0x4d   :  { %v146_v59 = vsub.s32 32, %v145_v58  ;;  %v147_v60 = vshll.u32 %v138_v53, %v145_v58  ;;  %v150_v61 = vsub.s32 4294967266, %v145_v58 }
  0x4f   :  { %v148_v49 = vshrl.u32 %v130_v31, %v146_v59  ;;  %v151_v62 = vadd.s32 127, %v150_v61  ;;  %v338_v31 = vld [vmem:[%s564_s6] ss:$0 sm:$0xff] }
  0x51   :  { %v149_v63 = vor.u32 %v148_v49, %v147_v60  ;;  %v152_v0 = vshll.u32 %v151_v62, 23 }
  0x53   :  { %v153_v3 = vor.u32 4788187, %v152_v0  ;;  %v156_v4 = vcvt.s32.f32 %v149_v63 }
  0x55   :  { %v154_v6 = vand.u32 2147483647, %v153_v3 }
  0x57   :  { %v157_v8 = vmul.f32 %v156_v4, %v154_v6 }
  0x59   :  { %v158_v10 = vxor.u32 2147483648, %v157_v8 }
  0x5b   :  { %v159_v11 = vsel %vm38_vm12, %v158_v10, %v157_v8 }
  0x5c   :  { %v162_v13 = vsel %vm527_vm13, %v453_v15, %v159_v11  ;;  %v336_v15 = vld [vmem:[%s561_s3] ss:$0 sm:$0xff] }
  0x5d   :  { %v164_v14 = vmul.f32 %v162_v13, %v162_v13 }
  0x5f   :  { %v165_v16 = vmul.f32 -0.001358992, %v164_v14  ;;  %v172_v17 = vmul.f32 -0.00019511016, %v164_v14 }
  0x61   :  { %v166_v19 = vadd.f32 0.041655596, %v165_v16  ;;  %v173_v20 = vadd.f32 0.008332121, %v172_v17 }
  0x63   :  { %v167_v22 = vmul.f32 %v166_v19, %v164_v14  ;;  %v174_v23 = vmul.f32 %v173_v20, %v164_v14 }
  0x65   :  { %v168_v24 = vadd.f32 -0.4999988, %v167_v22  ;;  %v175_v25 = vadd.f32 -0.16666654, %v174_v23 }
  0x67   :  { %v169_v27 = vmul.f32 %v168_v24, %v164_v14  ;;  %v176_v28 = vmul.f32 %v175_v25, %v164_v14 }
  0x69   :  { %v170_v29 = vadd.f32 1.0, %v169_v27  ;;  %v177_v30 = vadd.f32 1.0, %v176_v28 }
  0x6b   :  { %v178_v32 = vmul.f32 %v177_v30, %v162_v13  ;;  %v186_v33 = vxor.u32 2147483648, %v170_v29 }
  0x6d   :  { %v183_v34 = vxor.u32 2147483648, %v178_v32  ;;  %v187_v35 = vsel %vm185_vm14, %v186_v33, %v178_v32 }
  0x6f   :  { %v184_v36 = vsel %vm182_vm15, %v170_v29, %v183_v34 }
  0x70   :  { %v188_v37 = vsel %vm181_vm0, %v184_v36, %v187_v35 }
  0x71   :  { %v189_v38 = vsel %vm179_vm1, nan, %v188_v37 }
  0x72   :  { %226 = vmatmul.f32.vlgmr.msra.gmra.mxu0 %v189_v38 }
  0xef   :  { %v227_v41 = vpop.f32.mrf.mxu0 }
  0xf0   :  { %v228_v42 = vadd.f32 %v336_v15, %v227_v41 }
  0xf2   :  { %326 = vmatmul.msk.f32.vlgmr.msra.gmra.mxu1 %vm236_vm2, %v228_v42 }
 0x16f   :  { %v257_v43 = vpop.f32.mrf.mxu1 }
 0x170   :  { %v260_v44 = vsub.f32 %v228_v42, %v257_v43 }
 0x172   :  { %v261_v45 = vmul.f32 %v260_v44, %v260_v44 }
 0x174   :  { %327 = vmatmul.msk.f32.vlgmr.msra.gmra.mxu2 %vm236_vm2, %v261_v45 }
 0x1f7   :  { %v282_v46 = vpop.f32.mrf.mxu2 }
 0x1f8   :  { %v283_v47 = vadd.f32 1e-05, %v282_v46 }
 0x1fa   :  { %341 = vrsqrt.f32 %v283_v47  ;;  %vm291_vm4 = vweird.f32 %v283_v47 }
 0x200   :  { %v342_v48 = vpop.eup %341 }
 0x201   :  { %v286_v50 = vmul.f32 %v342_v48, %v283_v47  ;;  %vm292_vm3 = vweird.f32 %v342_v48 }
 0x202   :  { %vm293_vm5 = vmor %vm291_vm4, %vm292_vm3 }
 0x203   :  { %v287_v51 = vmul.f32 %v342_v48, %v286_v50 }
 0x205   :  { %v288_v52 = vmul.f32 0.5, %v287_v51 }
 0x207   :  { %v289_v53 = vsub.f32 1.5, %v288_v52 }
 0x209   :  { %v290_v54 = vmul.f32 %v342_v48, %v289_v53 }
 0x20b   :  { %v294_v56 = vsel %vm293_vm5, %v342_v48, %v290_v54 }
 0x20c   :  { %v295_v57 = vmul.f32 %v294_v56, %v260_v44 }
 0x20e   :  { %v300_v58 = vmul.f32 %v337_v55, %v295_v57 }
 0x210   :  { %v305_v59 = vadd.f32 %v338_v31, %v300_v58 }
 0x212   :  { %306 = vst.msk [vmem:[#allocation3] sm:$0xff] %vm236_vm2, %v305_v59 }
 0x213   :  { %317 = dma.vmem_to_hbm [thread:$0]  %s313_s27, 128, %s315_s30, [#allocation4]  }
 0x214   :  { %367 = dma.done.wait [#allocation4], 128  }
 0x215   :  { %368 = vsyncadd [#allocation4], 4294967168 }
 0x216   :  { %322 = vsyncpa [#allocation4], 1 }

</bundles_post_ra>
